<compile_context>
chip_gen: v5e
topology: v5e:2x2
jax: 0.10.0
libtpu: 0.0.40
codegen_flags: <defaults>
</compile_context>

<pallas_src>
import functools
import math

import jax
import jax.numpy as jnp
from jax.experimental import pallas as pl
from jax.experimental.pallas import tpu as pltpu


def _acos_poly(x):
    """arccos(x) for x in [-1, 1] via A&S 4.4.46 (|error| <= 2e-8 rad).

    Uses only mul/add/sqrt/abs/select -> VPU + EUP, no special lowering needed.
    """
    ax = jnp.abs(x)
    p = jnp.float32(-0.0012624911)
    p = p * ax + jnp.float32(0.0066700901)
    p = p * ax + jnp.float32(-0.0170881256)
    p = p * ax + jnp.float32(0.0308918810)
    p = p * ax + jnp.float32(-0.0501743046)
    p = p * ax + jnp.float32(0.0889789874)
    p = p * ax + jnp.float32(-0.2145988016)
    p = p * ax + jnp.float32(1.5707963050)
    r = jnp.sqrt(jnp.maximum(1.0 - ax, 0.0)) * p
    return jnp.where(x >= 0.0, r, jnp.float32(math.pi) - r)


def _make_hloss_kernel(B, C, H, W, la1, la2):
    HW = H * W
    eps = 1e-6
    # Exact element counts of the reference means (computed in Python -> f32
    # constants; kernel only multiplies by reciprocals).
    w_l1 = 1.0 / float(B * C * H * W)
    w_sam = float(la1) / (float(B * H * W) * math.pi)
    w_grad = float(la2) / float(B * (C - 1) * (H - 1) * (W - 1))

    def kernel(smask_ref, y_ref, gt_ref, out_ref, acc_ref):
        b = pl.program_id(0)
        nb = pl.num_programs(0)

        @pl.when(b == 0)
        def _init():
            acc_ref[0] = 0.0   # sum |y - gt|
            acc_ref[1] = 0.0   # sum acos(cosA)
            acc_ref[2] = 0.0   # sum |grad(y) - grad(gt)| over valid region

        y = y_ref[0]            # (C, HW)  lane-dense
        gt = gt_ref[0]          # (C, HW)
        smask = smask_ref[...]  # (1, HW)  1.0 where h>=1 and w>=1

        # ---- loss1: fidelity L1 (partial sum) ----
        acc_ref[0] += jnp.sum(jnp.abs(y - gt))

        # ---- SAM: channel (sublane) reductions -> clamped cosine -> acos ----
        inner = jnp.sum(y * gt, axis=0, keepdims=True)                       # (1, HW)
        nrm2 = (jnp.sum(y * y, axis=0, keepdims=True) *
                jnp.sum(gt * gt, axis=0, keepdims=True))
        divisor = jnp.sqrt(nrm2)                                             # ||y||*||gt||
        divisor = divisor + (divisor == 0.0).astype(jnp.float32) * eps       # ref guard
        cosA = jnp.clip(inner / divisor, -1.0 + eps, 1.0 - eps)
        acc_ref[1] += jnp.sum(_acos_poly(cosA))

        # ---- loss3: spectral-spatial gradient L1 via rolls + boundary mask ----
        def grad_mag(x):
            # neighbour at w-1 / h-1 via lane rolls on the flattened spatial axis
            d_w = x - pltpu.roll(x, shift=1, axis=1)
            d_h = x - pltpu.roll(x, shift=W, axis=1)
            # neighbour at c-1 (tiny C axis): wrap-shift by concatenation
            x_cm1 = jnp.concatenate([x[C - 1:C, :], x[:C - 1, :]], axis=0)
            d_c = x - x_cm1
            return jnp.sqrt(d_w * d_w + d_h * d_h + d_c * d_c + 1e-6)

        # valid region: c>=1 (iota mask) and h>=1, w>=1 (precomputed spatial mask)
        cmask = (jax.lax.broadcasted_iota(jnp.int32, (C, HW), 0) > 0
                 ).astype(jnp.float32)
        gdiff = jnp.abs(grad_mag(y) - grad_mag(gt)) * (cmask * smask)
        acc_ref[2] += jnp.sum(gdiff)

        # ---- finalize: weighted combination, single scalar out ----
        @pl.when(b == nb - 1)
        def _finalize():
            out_ref[0] = (acc_ref[0] * w_l1
                          + acc_ref[1] * w_sam
                          + acc_ref[2] * w_grad)

    return kernel


@functools.partial(jax.jit, static_argnames=("la1", "la2"))
def hloss_pallas(y, gt, la1=0.1, la2=0.1):
    B, C, H, W = y.shape
    HW = H * W

    # Lane-dense view: last dim = H*W (multiple of 128 for these sizes).
    y3 = y.reshape(B, C, HW)
    gt3 = gt.reshape(B, C, HW)

    # Spatial validity mask for the gradient term (h >= 1 and w >= 1), built
    # once in XLA so the kernel needs no integer modulo.
    s = jnp.arange(HW, dtype=jnp.int32)
    smask = (((s % W) != 0) & (s >= W)).astype(jnp.float32).reshape(1, HW)

    kernel = _make_hloss_kernel(B, C, H, W, float(la1), float(la2))

    grid_spec = pltpu.PrefetchScalarGridSpec(
        num_scalar_prefetch=0,
        grid=(B,),
        in_specs=[
            pl.BlockSpec((1, HW), lambda b: (0, 0)),          # spatial mask (resident)
            pl.BlockSpec((1, C, HW), lambda b: (b, 0, 0)),    # y tile
            pl.BlockSpec((1, C, HW), lambda b: (b, 0, 0)),    # gt tile
        ],
        out_specs=pl.BlockSpec((1,), lambda b: (0,),
                               memory_space=pltpu.MemorySpace.SMEM),
        scratch_shapes=[pltpu.SMEM((3,), jnp.float32)],       # persistent partial sums
    )

    out = pl.pallas_call(
        kernel,
        out_shape=jax.ShapeDtypeStruct((1,), jnp.float32),
        grid_spec=grid_spec,
        compiler_params=pltpu.CompilerParams(
            # batch tiles share the scalar accumulators -> must stay "arbitrary"
            dimension_semantics=("arbitrary",),
        ),
    )(smask, y3, gt3)
    return out[0]


def hloss_ref(y, gt, la1=0.1, la2=0.1):
    """Pure-JAX reference mirroring the PyTorch HLoss forward."""
    eps = 1e-6
    loss1 = jnp.mean(jnp.abs(y - gt))
    inner = jnp.sum(y * gt, axis=1, keepdims=True)
    len1 = jnp.sqrt(jnp.sum(y * y, axis=1, keepdims=True))
    len2 = jnp.sqrt(jnp.sum(gt * gt, axis=1, keepdims=True))
    div = len1 * len2
    div = div + (div == 0.0).astype(jnp.float32) * eps
    cosA = jnp.clip(jnp.sum(inner / div, axis=1), -1.0 + eps, 1.0 - eps)
    sam = jnp.mean(jnp.arccos(cosA)) / jnp.pi

    def cal_gradient(x):
        core = x[:, 1:, 1:, 1:]
        gx = core - x[:, 1:, :-1, 1:]
        gy = core - x[:, 1:, 1:, :-1]
        gc = core - x[:, :-1, 1:, 1:]
        return jnp.sqrt(gx * gx + gy * gy + gc * gc + 1e-6)

    loss3 = jnp.mean(jnp.abs(cal_gradient(y) - cal_gradient(gt)))
    return loss1 + la1 * sam + la2 * loss3


if __name__ == "__main__":
    # HLoss(la1, la2) hyperparameters (no learned weights in this module).
    la1, la2 = 0.1, 0.1

    key = jax.random.PRNGKey(0)
    k1, k2 = jax.random.split(key)
    B, C, H, W = 2, 4, 16, 16
    y = jax.random.uniform(k1, (B, C, H, W), dtype=jnp.float32)
    gt = jax.random.uniform(k2, (B, C, H, W), dtype=jnp.float32)

    out = hloss_pallas(y, gt, la1=la1, la2=la2)
    out = jax.block_until_ready(out)

    ref = hloss_ref(y, gt, la1=la1, la2=la2)
    assert jnp.allclose(out, ref, rtol=1e-5, atol=1e-5), (out, ref)

    print("KERNEL_OK")
</pallas_src>

<mosaic_0001>
module attributes {stable_mosaic.version = 11 : i64} {
  func.func @kernel(%arg0: i32, %arg1: memref<1x256xf32, #tpu.memory_space<vmem>>, %arg2: memref<1x4x256xf32, #tpu.memory_space<vmem>>, %arg3: memref<1x4x256xf32, #tpu.memory_space<vmem>>, %arg4: memref<1xf32, #tpu.memory_space<smem>>, %arg5: memref<3xf32, #tpu.memory_space<smem>>) attributes {dimension_semantics = [#tpu.dimension_semantics<arbitrary>], iteration_bounds = array<i64: 2>, scalar_prefetch = 0 : i64, scratch_operands = 1 : i64, tpu.core_type = #tpu.core_type<tc>, window_params = [{pipeline_mode = #tpu.pipeline_mode<synchronous>, transform_indices = @transform_0, window_bounds = array<i64: 1, 256>}, {transform_indices = @transform_1, window_bounds = array<i64: 1, 4, 256>}, {transform_indices = @transform_2, window_bounds = array<i64: 1, 4, 256>}, {transform_indices = @transform_3, window_bounds = array<i64: 1>}]} {
    %c0_i32 = arith.constant 0 : i32
    %0 = arith.cmpi eq, %arg0, %c0_i32 : i32
    %1 = arith.extui %0 : i1 to i32
    %c0_i32_0 = arith.constant 0 : i32
    %2 = arith.cmpi ne, %1, %c0_i32_0 : i32
    scf.if %2 {
      %cst_40 = arith.constant 0.000000e+00 : f32
      %c0_41 = arith.constant 0 : index
      %133 = memref.load %arg5[%c0_41] : memref<3xf32, #tpu.memory_space<smem>>
      memref.store %cst_40, %arg5[%c0_41] : memref<3xf32, #tpu.memory_space<smem>>
      %cst_42 = arith.constant 0.000000e+00 : f32
      %c1_43 = arith.constant 1 : index
      %134 = memref.load %arg5[%c1_43] : memref<3xf32, #tpu.memory_space<smem>>
      memref.store %cst_42, %arg5[%c1_43] : memref<3xf32, #tpu.memory_space<smem>>
      %cst_44 = arith.constant 0.000000e+00 : f32
      %c2_45 = arith.constant 2 : index
      %135 = memref.load %arg5[%c2_45] : memref<3xf32, #tpu.memory_space<smem>>
      memref.store %cst_44, %arg5[%c2_45] : memref<3xf32, #tpu.memory_space<smem>>
    } else {
    }
    %c0 = arith.constant 0 : index
    %c0_1 = arith.constant 0 : index
    %c0_2 = arith.constant 0 : index
    %3 = vector.load %arg2[%c0, %c0_1, %c0_2] : memref<1x4x256xf32, #tpu.memory_space<vmem>>, vector<1x4x256xf32>
    %4 = vector.shape_cast %3 : vector<1x4x256xf32> to vector<4x256xf32>
    %c0_3 = arith.constant 0 : index
    %c0_4 = arith.constant 0 : index
    %c0_5 = arith.constant 0 : index
    %5 = vector.load %arg3[%c0_3, %c0_4, %c0_5] : memref<1x4x256xf32, #tpu.memory_space<vmem>>, vector<1x4x256xf32>
    %6 = vector.shape_cast %5 : vector<1x4x256xf32> to vector<4x256xf32>
    %c0_6 = arith.constant 0 : index
    %c0_7 = arith.constant 0 : index
    %7 = vector.load %arg1[%c0_6, %c0_7] : memref<1x256xf32, #tpu.memory_space<vmem>>, vector<1x256xf32>
    %c0_8 = arith.constant 0 : index
    %8 = memref.load %arg5[%c0_8] : memref<3xf32, #tpu.memory_space<smem>>
    %9 = arith.subf %4, %6 : vector<4x256xf32>
    %10 = math.absf %9 : vector<4x256xf32>
    %11 = vector.shape_cast %10 : vector<4x256xf32> to vector<1x4x256xf32>
    %cst = arith.constant dense<0.000000e+00> : vector<1xf32>
    %12 = vector.multi_reduction <add>, %11, %cst [1, 2] : vector<1x4x256xf32> to vector<1xf32>
    %13 = vector.shape_cast %12 : vector<1xf32> to vector<1x1x1xf32>
    %14 = vector.extract %13[0, 0, 0] : f32 from vector<1x1x1xf32>
    %15 = arith.addf %8, %14 : f32
    %c0_9 = arith.constant 0 : index
    %16 = memref.load %arg5[%c0_9] : memref<3xf32, #tpu.memory_space<smem>>
    memref.store %15, %arg5[%c0_9] : memref<3xf32, #tpu.memory_space<smem>>
    %17 = arith.mulf %4, %6 : vector<4x256xf32>
    %cst_10 = arith.constant dense<0.000000e+00> : vector<256xf32>
    %18 = vector.multi_reduction <add>, %17, %cst_10 [0] : vector<4x256xf32> to vector<256xf32>
    %19 = vector.shape_cast %18 : vector<256xf32> to vector<1x256xf32>
    %20 = arith.mulf %4, %4 : vector<4x256xf32>
    %cst_11 = arith.constant dense<0.000000e+00> : vector<256xf32>
    %21 = vector.multi_reduction <add>, %20, %cst_11 [0] : vector<4x256xf32> to vector<256xf32>
    %22 = vector.shape_cast %21 : vector<256xf32> to vector<1x256xf32>
    %23 = arith.mulf %6, %6 : vector<4x256xf32>
    %cst_12 = arith.constant dense<0.000000e+00> : vector<256xf32>
    %24 = vector.multi_reduction <add>, %23, %cst_12 [0] : vector<4x256xf32> to vector<256xf32>
    %25 = vector.shape_cast %24 : vector<256xf32> to vector<1x256xf32>
    %26 = arith.mulf %22, %25 : vector<1x256xf32>
    %27 = math.sqrt %26 : vector<1x256xf32>
    %cst_13 = arith.constant 0.000000e+00 : f32
    %28 = vector.broadcast %cst_13 : f32 to vector<1x256xf32>
    %29 = arith.cmpf oeq, %27, %28 : vector<1x256xf32>
    %30 = arith.extui %29 : vector<1x256xi1> to vector<1x256xi32>
    %31 = arith.sitofp %30 : vector<1x256xi32> to vector<1x256xf32>
    %cst_14 = arith.constant 9.99999997E-7 : f32
    %32 = vector.broadcast %cst_14 : f32 to vector<1x256xf32>
    %33 = arith.mulf %31, %32 : vector<1x256xf32>
    %34 = arith.addf %27, %33 : vector<1x256xf32>
    %35 = arith.divf %19, %34 : vector<1x256xf32>
    %cst_15 = arith.constant -0.999998986 : f32
    %cst_16 = arith.constant 0.999998986 : f32
    %36 = vector.broadcast %cst_15 : f32 to vector<1x256xf32>
    %37 = arith.maximumf %36, %35 : vector<1x256xf32>
    %38 = vector.broadcast %cst_16 : f32 to vector<1x256xf32>
    %39 = arith.minimumf %38, %37 : vector<1x256xf32>
    %c1 = arith.constant 1 : index
    %40 = memref.load %arg5[%c1] : memref<3xf32, #tpu.memory_space<smem>>
    %41 = math.absf %39 : vector<1x256xf32>
    %cst_17 = arith.constant -0.0012624911 : f32
    %42 = vector.broadcast %cst_17 : f32 to vector<1x256xf32>
    %43 = arith.mulf %42, %41 : vector<1x256xf32>
    %cst_18 = arith.constant 6.670090e-03 : f32
    %44 = vector.broadcast %cst_18 : f32 to vector<1x256xf32>
    %45 = arith.addf %43, %44 : vector<1x256xf32>
    %46 = arith.mulf %45, %41 : vector<1x256xf32>
    %cst_19 = arith.constant -0.0170881264 : f32
    %47 = vector.broadcast %cst_19 : f32 to vector<1x256xf32>
    %48 = arith.addf %46, %47 : vector<1x256xf32>
    %49 = arith.mulf %48, %41 : vector<1x256xf32>
    %cst_20 = arith.constant 0.0308918804 : f32
    %50 = vector.broadcast %cst_20 : f32 to vector<1x256xf32>
    %51 = arith.addf %49, %50 : vector<1x256xf32>
    %52 = arith.mulf %51, %41 : vector<1x256xf32>
    %cst_21 = arith.constant -0.0501743034 : f32
    %53 = vector.broadcast %cst_21 : f32 to vector<1x256xf32>
    %54 = arith.addf %52, %53 : vector<1x256xf32>
    %55 = arith.mulf %54, %41 : vector<1x256xf32>
    %cst_22 = arith.constant 0.0889789909 : f32
    %56 = vector.broadcast %cst_22 : f32 to vector<1x256xf32>
    %57 = arith.addf %55, %56 : vector<1x256xf32>
    %58 = arith.mulf %57, %41 : vector<1x256xf32>
    %cst_23 = arith.constant -0.214598805 : f32
    %59 = vector.broadcast %cst_23 : f32 to vector<1x256xf32>
    %60 = arith.addf %58, %59 : vector<1x256xf32>
    %61 = arith.mulf %60, %41 : vector<1x256xf32>
    %cst_24 = arith.constant 1.57079625 : f32
    %62 = vector.broadcast %cst_24 : f32 to vector<1x256xf32>
    %63 = arith.addf %61, %62 : vector<1x256xf32>
    %cst_25 = arith.constant 1.000000e+00 : f32
    %64 = vector.broadcast %cst_25 : f32 to vector<1x256xf32>
    %65 = arith.subf %64, %41 : vector<1x256xf32>
    %cst_26 = arith.constant 0.000000e+00 : f32
    %66 = vector.broadcast %cst_26 : f32 to vector<1x256xf32>
    %67 = arith.maximumf %65, %66 : vector<1x256xf32>
    %68 = math.sqrt %67 : vector<1x256xf32>
    %69 = arith.mulf %68, %63 : vector<1x256xf32>
    %cst_27 = arith.constant 0.000000e+00 : f32
    %70 = vector.broadcast %cst_27 : f32 to vector<1x256xf32>
    %71 = arith.cmpf oge, %39, %70 : vector<1x256xf32>
    %cst_28 = arith.constant 3.14159274 : f32
    %72 = vector.broadcast %cst_28 : f32 to vector<1x256xf32>
    %73 = arith.subf %72, %69 : vector<1x256xf32>
    %74 = arith.select %71, %69, %73 : vector<1x256xi1>, vector<1x256xf32>
    %75 = vector.shape_cast %74 : vector<1x256xf32> to vector<1x1x256xf32>
    %cst_29 = arith.constant dense<0.000000e+00> : vector<1xf32>
    %76 = vector.multi_reduction <add>, %75, %cst_29 [1, 2] : vector<1x1x256xf32> to vector<1xf32>
    %77 = vector.shape_cast %76 : vector<1xf32> to vector<1x1x1xf32>
    %78 = vector.extract %77[0, 0, 0] : f32 from vector<1x1x1xf32>
    %79 = arith.addf %40, %78 : f32
    %c1_30 = arith.constant 1 : index
    %80 = memref.load %arg5[%c1_30] : memref<3xf32, #tpu.memory_space<smem>>
    memref.store %79, %arg5[%c1_30] : memref<3xf32, #tpu.memory_space<smem>>
    %81 = tpu.iota {dimensions = array<i32: 0>} : vector<4x256xi32>
    %c0_i32_31 = arith.constant 0 : i32
    %82 = vector.broadcast %c0_i32_31 : i32 to vector<4x256xi32>
    %83 = arith.cmpi sgt, %81, %82 : vector<4x256xi32>
    %84 = arith.extui %83 : vector<4x256xi1> to vector<4x256xi32>
    %85 = arith.sitofp %84 : vector<4x256xi32> to vector<4x256xf32>
    %c1_i32 = arith.constant 1 : i32
    %86 = tpu.dynamic_rotate %4 by %c1_i32 dim 1 : vector<4x256xf32>, i32 -> vector<4x256xf32>
    %87 = arith.subf %4, %86 : vector<4x256xf32>
    %c16_i32 = arith.constant 16 : i32
    %88 = tpu.dynamic_rotate %4 by %c16_i32 dim 1 : vector<4x256xf32>, i32 -> vector<4x256xf32>
    %89 = arith.subf %4, %88 : vector<4x256xf32>
    %90 = vector.extract_strided_slice %4 {offsets = [3, 0], sizes = [1, 256], strides = [1, 1]} : vector<4x256xf32> to vector<1x256xf32>
    %91 = vector.extract_strided_slice %4 {offsets = [0, 0], sizes = [3, 256], strides = [1, 1]} : vector<4x256xf32> to vector<3x256xf32>
    %92 = tpu.concatenate %90, %91 in 0 : vector<1x256xf32>, vector<3x256xf32> -> vector<4x256xf32>
    %93 = arith.subf %4, %92 : vector<4x256xf32>
    %94 = arith.mulf %87, %87 : vector<4x256xf32>
    %95 = arith.mulf %89, %89 : vector<4x256xf32>
    %96 = arith.addf %94, %95 : vector<4x256xf32>
    %97 = arith.mulf %93, %93 : vector<4x256xf32>
    %98 = arith.addf %96, %97 : vector<4x256xf32>
    %cst_32 = arith.constant 9.99999997E-7 : f32
    %99 = vector.broadcast %cst_32 : f32 to vector<4x256xf32>
    %100 = arith.addf %98, %99 : vector<4x256xf32>
    %101 = math.sqrt %100 : vector<4x256xf32>
    %c1_i32_33 = arith.constant 1 : i32
    %102 = tpu.dynamic_rotate %6 by %c1_i32_33 dim 1 : vector<4x256xf32>, i32 -> vector<4x256xf32>
    %103 = arith.subf %6, %102 : vector<4x256xf32>
    %c16_i32_34 = arith.constant 16 : i32
    %104 = tpu.dynamic_rotate %6 by %c16_i32_34 dim 1 : vector<4x256xf32>, i32 -> vector<4x256xf32>
    %105 = arith.subf %6, %104 : vector<4x256xf32>
    %106 = vector.extract_strided_slice %6 {offsets = [3, 0], sizes = [1, 256], strides = [1, 1]} : vector<4x256xf32> to vector<1x256xf32>
    %107 = vector.extract_strided_slice %6 {offsets = [0, 0], sizes = [3, 256], strides = [1, 1]} : vector<4x256xf32> to vector<3x256xf32>
    %108 = tpu.concatenate %106, %107 in 0 : vector<1x256xf32>, vector<3x256xf32> -> vector<4x256xf32>
    %109 = arith.subf %6, %108 : vector<4x256xf32>
    %110 = arith.mulf %103, %103 : vector<4x256xf32>
    %111 = arith.mulf %105, %105 : vector<4x256xf32>
    %112 = arith.addf %110, %111 : vector<4x256xf32>
    %113 = arith.mulf %109, %109 : vector<4x256xf32>
    %114 = arith.addf %112, %113 : vector<4x256xf32>
    %cst_35 = arith.constant 9.99999997E-7 : f32
    %115 = vector.broadcast %cst_35 : f32 to vector<4x256xf32>
    %116 = arith.addf %114, %115 : vector<4x256xf32>
    %117 = math.sqrt %116 : vector<4x256xf32>
    %118 = arith.subf %101, %117 : vector<4x256xf32>
    %119 = math.absf %118 : vector<4x256xf32>
    %120 = vector.broadcast %7 : vector<1x256xf32> to vector<4x256xf32>
    %121 = arith.mulf %85, %120 : vector<4x256xf32>
    %122 = arith.mulf %119, %121 : vector<4x256xf32>
    %c2 = arith.constant 2 : index
    %123 = memref.load %arg5[%c2] : memref<3xf32, #tpu.memory_space<smem>>
    %124 = vector.shape_cast %122 : vector<4x256xf32> to vector<1x4x256xf32>
    %cst_36 = arith.constant dense<0.000000e+00> : vector<1xf32>
    %125 = vector.multi_reduction <add>, %124, %cst_36 [1, 2] : vector<1x4x256xf32> to vector<1xf32>
    %126 = vector.shape_cast %125 : vector<1xf32> to vector<1x1x1xf32>
    %127 = vector.extract %126[0, 0, 0] : f32 from vector<1x1x1xf32>
    %128 = arith.addf %123, %127 : f32
    %c2_37 = arith.constant 2 : index
    %129 = memref.load %arg5[%c2_37] : memref<3xf32, #tpu.memory_space<smem>>
    memref.store %128, %arg5[%c2_37] : memref<3xf32, #tpu.memory_space<smem>>
    %c1_i32_38 = arith.constant 1 : i32
    %130 = arith.cmpi eq, %arg0, %c1_i32_38 : i32
    %131 = arith.extui %130 : i1 to i32
    %c0_i32_39 = arith.constant 0 : i32
    %132 = arith.cmpi ne, %131, %c0_i32_39 : i32
    scf.if %132 {
      %c0_40 = arith.constant 0 : index
      %133 = memref.load %arg5[%c0_40] : memref<3xf32, #tpu.memory_space<smem>>
      %cst_41 = arith.constant 4.8828125E-4 : f32
      %134 = arith.mulf %133, %cst_41 : f32
      %c1_42 = arith.constant 1 : index
      %135 = memref.load %arg5[%c1_42] : memref<3xf32, #tpu.memory_space<smem>>
      %cst_43 = arith.constant 6.216990e-05 : f32
      %136 = arith.mulf %135, %cst_43 : f32
      %137 = arith.addf %134, %136 : f32
      %c2_44 = arith.constant 2 : index
      %138 = memref.load %arg5[%c2_44] : memref<3xf32, #tpu.memory_space<smem>>
      %cst_45 = arith.constant 7.40740724E-5 : f32
      %139 = arith.mulf %138, %cst_45 : f32
      %140 = arith.addf %137, %139 : f32
      %c0_46 = arith.constant 0 : index
      %141 = memref.load %arg4[%c0_46] : memref<1xf32, #tpu.memory_space<smem>>
      memref.store %140, %arg4[%c0_46] : memref<1xf32, #tpu.memory_space<smem>>
    } else {
    }
    return
  }
  func.func @transform_0(%arg0: i32) -> (i32, i32) {
    %c0_i32 = arith.constant 0 : i32
    %c0_i32_0 = arith.constant 0 : i32
    %c0_i32_1 = arith.constant 0 : i32
    return %c0_i32, %c0_i32_0 : i32, i32
  }
  func.func @transform_1(%arg0: i32) -> (i32, i32, i32) {
    %c0_i32 = arith.constant 0 : i32
    %c0_i32_0 = arith.constant 0 : i32
    %c0_i32_1 = arith.constant 0 : i32
    return %arg0, %c0_i32, %c0_i32_0 : i32, i32, i32
  }
  func.func @transform_2(%arg0: i32) -> (i32, i32, i32) {
    %c0_i32 = arith.constant 0 : i32
    %c0_i32_0 = arith.constant 0 : i32
    %c0_i32_1 = arith.constant 0 : i32
    return %arg0, %c0_i32, %c0_i32_0 : i32, i32, i32
  }
  func.func @transform_3(%arg0: i32) -> i32 {
    %c0_i32 = arith.constant 0 : i32
    %c0_i32_0 = arith.constant 0 : i32
    return %c0_i32 : i32
  }
}

</mosaic_0001>

<bundles_post_ra>
// kernel: hloss_pallas.1
= control target key start
LH: loop header
LB: loop body
LE: loop exit
PB: predicated region body
PF: predicated region fallthrough
CT: control target
= control target key end

     0   :  { %8 = vsyncpa [#allocation4], 0  ;;  %s819_s12 = smov 0   ;;  %s1013_s0 = inlined_call_operand.vmem [shape: f32[1,256], index: 0, kind: input, shape index: {}]   ;;  %s1014_s1 = inlined_call_operand.vmem [shape: f32[2,4,256], index: 1, kind: input, shape index: {}]   ;;  %s1015_s2 = inlined_call_operand.vmem [shape: f32[2,4,256], index: 2, kind: input, shape index: {}]   ;;  %s1016_s3 = inlined_call_operand.hbm [shape: f32[1], index: 3, kind: output, shape index: {}]  }
   0x1 LB: > { %s825_s13 = sadd.s32 4294967295, %s792_s12   ;;  %p697_p0 = scmp.ge.s32.totalorder %s792_s12, 1  ;;  %s792_s12 = sphi %s819_s12, %s14_s12  }
   0x2   : > { %p143_p1 = scmp.lt.s32.totalorder %s792_s12, 3 }
   0x4   : > { %p144_p2 = pnand %p697_p0, %p143_p1 }
   0x5   : > { %p167_p3 = scmp.lt.s32.totalorder (!%p144_p2), %s825_s13, 1  ;;  %s794_s22 = smov (!%p144_p2), 1  }
   0x6   : > { %147 = sbr.rel (%p144_p2) target bundleno = 449 (0x1c1), region = 32  ;;  %s795_s23 = smov (!%p144_p2), 16  }
   0x7   : > { %p735_p4 = scmp.eq.s32.totalorder (!%p144_p2), %s825_s13, 0  ;;  %s797_s26 = smov (!%p144_p2), 0.0  }
   0x8   : > { %p736_p5 = scmp.eq.s32.totalorder (!%p144_p2), %s825_s13, 1  ;;  %s798_s19 = smov (!%p144_p2), [#allocation3]  }
   0xb   : > { %s168_s14 = scalar_select %p167_p3, %s825_s13, 1  ;;  %vm199_vm0 = vcmask 1043456   ;;  %vm415_vm14 = vcmask 1040384  }
   0xc   : > { %726 = sst [smem:[#allocation2]] (%p735_p4), %s797_s26 }
   0xd   : > { %s717_s15 = sshll.u32 %s168_s14, 3  ;;  %727 = sst [smem:[#allocation2 + $0x1]] (%p735_p4), %s797_s26 }
   0xe   : > { %s171_s18 = scalar_lea.vmem %s1014_s1, %s717_s15  ;;  %s176_s21 = scalar_lea.vmem %s1015_s2, %s717_s15 }
   0xf   : > { %v837_v0 = vld [vmem:[%s171_s18] sm:$0xff]  ;;  %728 = sst [smem:[#allocation2 + $0x2]] (%p735_p4), %s797_s26  ;;  %s641_s15 = sshll.u32 %s1016_s3, 4  ;;  %s642_s15 = int_to_ptr.hbm [resolvable:$true] %s641_s15 }
  0x10   : > { %v839_v1 = vld [vmem:[%s176_s21] sm:$0xff]  ;;  %v236_v7 = vmul.f32 %v837_v0, %v837_v0  ;;  %s190_s27 = sld [smem:[#allocation2]] }
  0x11   : > { %v191_v2 = vsub.f32 %v837_v0, %v839_v1  ;;  %v215_v4 = vmul.f32 %v839_v1, %v837_v0  ;;  %v257_v10 = vmul.f32 %v839_v1, %v839_v1  ;;  %s707_s28 = sld [smem:[#allocation2 + $0x1]] }
  0x12   : > { %s709_s6 = sld [smem:[#allocation2 + $0x2]] }
  0x13   : > { %v192_v3 = vand.u32 2147483647, %v191_v2 }
  0x15   : > { %194 = vst [vmem:[#allocation1] ss:$2 sm:$0xff] %v192_v3 }
  0x1c   : > { %v845_v5 = vld.sshfl [vmem:[#allocation1] sm:$0xff pattern:$0x75316420]  ;;  %v847_v6 = vld.sshfl [vmem:[#allocation1 + $0x8] sm:$0xff pattern:$0x75316420] }
  0x1d   : > { %217 = vst [vmem:[#allocation1] ss:$2 sm:$0xff] %v215_v4 }
  0x24   : > { %v851_v8 = vld.sshfl [vmem:[#allocation1] sm:$0xff pattern:$0x75316420]  ;;  %v853_v9 = vld.sshfl [vmem:[#allocation1 + $0x8] sm:$0xff pattern:$0x75316420] }
  0x25   : > { %238 = vst [vmem:[#allocation1] ss:$2 sm:$0xff] %v236_v7 }
  0x2c   : > { %v239_v11 = vld.sshfl [vmem:[#allocation1] sm:$0xff pattern:$0x75316420]  ;;  %v240_v12 = vld.sshfl [vmem:[#allocation1 + $0x8] sm:$0xff pattern:$0x75316420] }
  0x2d   : > { %259 = vst [vmem:[#allocation1] ss:$2 sm:$0xff] %v257_v10  ;;  %v250_v25 = vsel %vm199_vm0, %v240_v12, 0.0  ;;  %v243_v27 = vsel %vm199_vm0, %v239_v11, 0.0 }
  0x2e   : > { %v251_v29 = vrot.slane %v250_v25, 4  ;;  %v244_v31 = vrot.slane %v243_v27, 4 }
  0x30   : > { %v252_v33 = vadd.f32 %v251_v29, %v250_v25  ;;  %v245_v35 = vadd.f32 %v244_v31, %v243_v27  ;;  %v229_v27 = vsel %vm199_vm0, %v853_v9, 0.0 }
  0x31   : > { %v230_v29 = vrot.slane %v229_v27, 4 }
  0x32   : > { %v253_v37 = vrot.slane %v252_v33, 2  ;;  %v246_v39 = vrot.slane %v245_v35, 2 }
  0x34   : > { %v260_v13 = vld.sshfl [vmem:[#allocation1] sm:$0xff pattern:$0x75316420]  ;;  %v261_v14 = vld.sshfl [vmem:[#allocation1 + $0x8] sm:$0xff pattern:$0x75316420]  ;;  %v254_v41 = vadd.f32 %v253_v37, %v252_v33  ;;  %v247_v43 = vadd.f32 %v246_v39, %v245_v35  ;;  %v431_v39 = vlaneseq }
  0x35   : > { %437 = vst [vmem:[#allocation1] ss:$2 sm:$0xff] %v837_v0  ;;  %v271_v26 = vsel %vm199_vm0, %v261_v14, 0.0  ;;  %v264_v28 = vsel %vm199_vm0, %v260_v13, 0.0 }
  0x36   : > { %v272_v30 = vrot.slane %v271_v26, 4  ;;  %v265_v32 = vrot.slane %v264_v28, 4  ;;  %v255_v45 = vrot.slane %v254_v41, 1  ;;  %v248_v47 = vrot.slane %v247_v43, 1 }
  0x38   : > { %v273_v34 = vadd.f32 %v272_v30, %v271_v26  ;;  %v266_v36 = vadd.f32 %v265_v32, %v264_v28  ;;  %v256_v49 = vadd.f32 %v255_v45, %v254_v41  ;;  %v249_v51 = vadd.f32 %v248_v47, %v247_v43 }
  0x39   : > { %v222_v26 = vsel %vm199_vm0, %v851_v8, 0.0  ;;  %v231_v32 = vadd.f32 %v230_v29, %v229_v27 }
  0x3a   : > { %v274_v38 = vrot.slane %v273_v34, 2  ;;  %v267_v40 = vrot.slane %v266_v36, 2  ;;  %v223_v28 = vrot.slane %v222_v26, 4 }
  0x3c   : > { %v438_v15 = vld.sshfl [vmem:[#allocation1] sm:$0xff pattern:$0x75316420]  ;;  %v439_v16 = vld.sshfl [vmem:[#allocation1 + $0x8] sm:$0xff pattern:$0x75316420]  ;;  %v275_v42 = vadd.f32 %v274_v38, %v273_v34  ;;  %v268_v44 = vadd.f32 %v267_v40, %v266_v36  ;;  %v224_v31 = vadd.f32 %v223_v28, %v222_v26 }
  0x3d   : > { %442 = vrot.lane.b32.xlu0 %v438_v15, %s794_s22  ;;  %457 = vst [vmem:[#allocation1] ss:$2 sm:$0xff] %v837_v0  ;;  %v232_v36 = vrot.slane %v231_v32, 2 }
  0x3e   : > { %v276_v46 = vrot.slane %v275_v42, 1  ;;  %v269_v48 = vrot.slane %v268_v44, 1  ;;  %v225_v35 = vrot.slane %v224_v31, 2 }
  0x3f   : > { %v233_v41 = vadd.f32 %v232_v36, %v231_v32 }
  0x40   : > { %v277_v50 = vadd.f32 %v276_v46, %v275_v42  ;;  %v270_v52 = vadd.f32 %v269_v48, %v268_v44  ;;  %v226_v40 = vadd.f32 %v225_v35, %v224_v31 }
  0x41   : > { %v234_v45 = vrot.slane %v233_v41, 1 }
  0x42   : > { %v279_v53 = vmul.f32 %v277_v50, %v256_v49  ;;  %v278_v54 = vmul.f32 %v270_v52, %v249_v51  ;;  %v227_v44 = vrot.slane %v226_v40, 1  ;;  %v878_v50 = vand.u32 127, %v431_v39 }
  0x44   : > { %v458_v17 = vld.sshfl [vmem:[#allocation1] sm:$0xff pattern:$0x75316420]  ;;  %v459_v18 = vld.sshfl [vmem:[#allocation1 + $0x8] sm:$0xff pattern:$0x75316420]  ;;  %752 = vrsqrt.f32 %v279_v53  ;;  %v228_v51 = vadd.f32 %v227_v44, %v226_v40 }
  0x45   : > { %462 = vrot.lane.b32.xlu1 %v458_v17, %s795_s23  ;;  %444 = vrot.lane.b32.xlu0 %v439_v16, %s794_s22  ;;  %479 = vst [vmem:[#allocation1] ss:$2 sm:$0xff] %v837_v0  ;;  %754 = vrsqrt.f32 %v278_v54  ;;  %vm299_vm1 = vcmp.eq.f32.partialorder %v279_v53, inf  ;;  %vm301_vm2 = vcmp.eq.f32.partialorder %v279_v53, 0.0  ;;  %v302_v10 = vand.u32 2147483648, %v279_v53 }
  0x46   : > { %vm287_vm3 = vcmp.eq.f32.partialorder %v278_v54, inf  ;;  %vm289_vm4 = vcmp.eq.f32.partialorder %v278_v54, 0.0  ;;  %v290_v14 = vand.u32 2147483648, %v278_v54  ;;  %v796_v16 = vmov 0.0  }
  0x4a   : > { %v753_v55 = vpop.eup %752 }
  0x4b   : > { %v755_v56 = vpop.eup %754  ;;  %v293_v57 = vmul.f32 %v753_v55, %v279_v53 }
  0x4c   : > { %v860_v19 = vld.sshfl [vmem:[#allocation1] sm:$0xff pattern:$0x75316420]  ;;  %v862_v20 = vld.sshfl [vmem:[#allocation1 + $0x8] sm:$0xff pattern:$0x75316420]  ;;  %v281_v58 = vmul.f32 %v755_v56, %v278_v54 }
  0x4d   : > { %464 = vrot.lane.b32.xlu1 %v459_v18, %s795_s23  ;;  %513 = vst [vmem:[#allocation1] ss:$2 sm:$0xff] %v839_v1  ;;  %v294_v59 = vmul.f32 %v753_v55, %v293_v57  ;;  %v235_v57 = vadd.f32 %v234_v45, %v233_v41 }
  0x4e   : > { %v282_v60 = vmul.f32 %v755_v56, %v281_v58 }
  0x4f   : > { %v295_v61 = vmul.f32 0.5, %v294_v59 }
  0x50   : > { %v283_v62 = vmul.f32 0.5, %v282_v60 }
  0x51   : > { %v296_v63 = vsub.f32 1.5, %v295_v61 }
  0x52   : > { %v284_v2 = vsub.f32 1.5, %v283_v62 }
  0x53   : > { %v297_v3 = vmul.f32 %v753_v55, %v296_v63  ;;  %v476_v55 = vperm.slane %v837_v0, 7 }
  0x54   : > { %v514_v21 = vld.sshfl [vmem:[#allocation1] sm:$0xff pattern:$0x75316420]  ;;  %v515_v22 = vld.sshfl [vmem:[#allocation1 + $0x8] sm:$0xff pattern:$0x75316420]  ;;  %v285_v4 = vmul.f32 %v755_v56, %v284_v2 }
  0x55   : > { %530 = vst [vmem:[#allocation1] ss:$2 sm:$0xff] %v839_v1  ;;  %518 = vrot.lane.b32.xlu2 %v514_v21, %s794_s22  ;;  %v298_v7 = vmul.f32 %v297_v3, %v279_v53  ;;  %v483_v56 = vrot.slane %v862_v20, 7  ;;  %v475_v3 = vperm.slane %v837_v0, 3  ;;  %v482_v20 = vrot.slane %v860_v19, 7 }
  0x56   : > { %v286_v12 = vmul.f32 %v285_v4, %v278_v54 }
  0x57   : > { %v300_v11 = vsel %vm299_vm1, %v279_v53, %v298_v7  ;;  %vm448_vm1 = vcmp.lt.s32.totalorder %v878_v50, 1  ;;  %v487_v4 = vsel %vm415_vm14, %v476_v55, %v483_v56  ;;  %v486_v19 = vsel %vm415_vm14, %v475_v3, %v482_v20 }
  0x58   : > { %v303_v13 = vsel %vm301_vm2, %v302_v10, %v300_v11  ;;  %v288_v15 = vsel %vm287_vm3, %v278_v54, %v286_v12  ;;  %vm466_vm2 = vcmp.lt.s32.totalorder %v878_v50, 16 }
  0x59   : > { %vm305_vm5 = vcmp.eq.f32.partialorder %v303_v13, 0.0  ;;  %v291_v18 = vsel %vm289_vm4, %v290_v14, %v288_v15 }
  0x5a   : > { %v704_v17 = vsel %vm305_vm5, 1.0, %v796_v16  ;;  %vm304_vm6 = vcmp.eq.f32.partialorder %v291_v18, 0.0 }
  0x5b   : > { %v311_v21 = vmul.f32 1e-06, %v704_v17  ;;  %v490_v17 = vrot.slane %v487_v4, 4 }
  0x5c   : > { %v532_v23 = vld.sshfl [vmem:[#allocation1 + $0x8] sm:$0xff pattern:$0x75316420]  ;;  %v531_v24 = vld.sshfl [vmem:[#allocation1] sm:$0xff pattern:$0x75316420] }
  0x5d   : > { %537 = vrot.lane.b32.xlu1 %v532_v23, %s795_s23  ;;  %535 = vrot.lane.b32.xlu0 %v531_v24, %s795_s23  ;;  %551 = vst [vmem:[#allocation1] ss:$2 sm:$0xff] %v839_v1  ;;  %v313_v23 = vadd.f32 %v311_v21, %v303_v13  ;;  %v491_v28 = vsel %vm199_vm0, %v486_v19, %v490_v17 }
  0x5e   : > { %520 = vrot.lane.b32.xlu2 %v515_v22, %s794_s22  ;;  %v703_v22 = vsel %vm304_vm6, 1.0, %v796_v16 }
  0x5f   : > { %v310_v24 = vmul.f32 1e-06, %v703_v22  ;;  %756 = vrcp.f32 %v313_v23  ;;  %v340_v49 = vand.u32 2147483648, %v313_v23  ;;  %vm334_vm11 = vweird.f32 %v313_v23 }
  0x60   : > { %v338_v58 = vand.u32 2147483647, %v313_v23 }
  0x61   : > { %v312_v25 = vadd.f32 %v310_v24, %v291_v18  ;;  %v341_v61 = vor.u32 1.1754944e-38, %v340_v49 }
  0x62   : > { %vm339_vm15 = vcmp.eq.f32.partialorder %v338_v58, 8.507059e+37 }
  0x63   : > { %758 = vrcp.f32 %v312_v25  ;;  %v325_v8 = vand.u32 2147483648, %v312_v25  ;;  %vm319_vm7 = vweird.f32 %v312_v25  ;;  %v323_v47 = vand.u32 2147483647, %v312_v25 }
  0x64   : > { %v553_v31 = vld.sshfl [vmem:[#allocation1 + $0x8] sm:$0xff pattern:$0x75316420] }
  0x65   : > { %v757_v30 = vpop.eup %756  ;;  %v326_v53 = vor.u32 1.1754944e-38, %v325_v8  ;;  %vm324_vm10 = vcmp.eq.f32.partialorder %v323_v47, 8.507059e+37 }
  0x66   : > { %v330_v33 = vmul.f32 %v757_v30, %v313_v23  ;;  %vm335_vm12 = vweird.f32 %v757_v30 }
  0x67   : > { %vm336_vm13 = vmor %vm334_vm11, %vm335_vm12 }
  0x68   : > { %v331_v38 = vsub.f32 1.0, %v330_v33 }
  0x69   : > { %v759_v34 = vpop.eup %758 }
  0x6a   : > { %v315_v37 = vmul.f32 %v759_v34, %v312_v25  ;;  %v332_v43 = vmul.f32 %v757_v30, %v331_v38  ;;  %vm320_vm8 = vweird.f32 %v759_v34  ;;  %v493_v38 = vsub.f32 %v837_v0, %v491_v28 }
  0x6b   : > { %vm880_vm9 = vmor %vm319_vm7, %vm320_vm8 }
  0x6c   : > { %v316_v42 = vsub.f32 1.0, %v315_v37  ;;  %v333_v48 = vadd.f32 %v757_v30, %v332_v43  ;;  %v555_v43 = vrot.slane %v553_v31, 7  ;;  %v497_v52 = vmul.f32 %v493_v38, %v493_v38 }
  0x6e   : > { %v317_v9 = vmul.f32 %v759_v34, %v316_v42  ;;  %v337_v60 = vsel %vm336_vm13, %v757_v30, %v333_v48  ;;  %v548_v42 = vperm.slane %v839_v1, 7 }
  0x6f   : > { %v342_v2 = vsel %vm339_vm15, %v341_v61, %v337_v60 }
  0x70   : > { %v318_v54 = vadd.f32 %v759_v34, %v317_v9  ;;  %v894_v7 = vmul.f32 %v342_v2, %v235_v57  ;;  %v559_v58 = vsel %vm415_vm14, %v548_v42, %v555_v43 }
  0x72   : > { %v322_v59 = vsel %vm880_vm9, %v759_v34, %v318_v54  ;;  %v706_v15 = vclamps-f32 %v894_v7, 0.999999  ;;  %v432_v7 = vshrl.u32 %v431_v39, 7 }
  0x73   : > { %v327_v62 = vsel %vm324_vm10, %v326_v53, %v322_v59  ;;  %v547_v53 = vperm.slane %v839_v1, 3 }
  0x74   : > { %v889_v63 = vmul.f32 %v327_v62, %v228_v51  ;;  %v909_v21 = vand.u32 2147483647, %v706_v15  ;;  %vm410_vm8 = vcmp.ge.f32.partialorder %v706_v15, 0.0  ;;  %vm433_vm9 = vcmp.gt.s32.totalorder %v432_v7, 0 }
  0x76   : > { %v705_v12 = vclamps-f32 %v889_v63, 0.999999  ;;  %v352_v26 = vmul.f32 -0.0012624911, %v909_v21  ;;  %v380_v27 = vsub.f32 1.0, %v909_v21 }
  0x78   : > { %v904_v18 = vand.u32 2147483647, %v705_v12  ;;  %v354_v32 = vadd.f32 0.00667009, %v352_v26  ;;  %v921_v33 = vmax.f32 %v380_v27, 0.0  ;;  %vm409_vm7 = vcmp.ge.f32.partialorder %v705_v12, 0.0 }
  0x7a   : > { %v351_v23 = vmul.f32 -0.0012624911, %v904_v18  ;;  %v379_v24 = vsub.f32 1.0, %v904_v18  ;;  %v356_v40 = vmul.f32 %v354_v32, %v909_v21  ;;  %vm402_vm5 = vcmp.eq.f32.partialorder %v921_v33, inf }
  0x7b   : > { %vm404_vm6 = vcmp.eq.f32.partialorder %v921_v33, 0.0 }
  0x7c   : > { %v353_v29 = vadd.f32 0.00667009, %v351_v23  ;;  %v919_v30 = vmax.f32 %v379_v24, 0.0  ;;  %v358_v47 = vadd.f32 -0.017088126, %v356_v40 }
  0x7e   : > { %v355_v36 = vmul.f32 %v353_v29, %v904_v18  ;;  %760 = vrsqrt.f32 %v919_v30  ;;  %v360_v54 = vmul.f32 %v358_v47, %v909_v21  ;;  %vm390_vm3 = vcmp.eq.f32.partialorder %v919_v30, inf }
  0x7f   : > { %762 = vrsqrt.f32 %v921_v33  ;;  %vm392_vm4 = vcmp.eq.f32.partialorder %v919_v30, 0.0 }
  0x80   : > { %v357_v8 = vadd.f32 -0.017088126, %v355_v36  ;;  %v362_v2 = vadd.f32 0.03089188, %v360_v54 }
  0x82   : > { %v359_v49 = vmul.f32 %v357_v8, %v904_v18 }
  0x84   : > { %v761_v55 = vpop.eup %760  ;;  %v361_v59 = vadd.f32 0.03089188, %v359_v49 }
  0x85   : > { %v763_v60 = vpop.eup %762 }
  0x86   : > { %v363_v3 = vmul.f32 %v361_v59, %v904_v18  ;;  %v396_v20 = vmul.f32 %v763_v60, %v921_v33 }
  0x88   : > { %v397_v23 = vmul.f32 %v763_v60, %v396_v20 }
  0x8a   : > { %v398_v29 = vmul.f32 0.5, %v397_v23 }
  0x8c   : > { %v399_v38 = vsub.f32 1.5, %v398_v29 }
  0x8e   : > { %v400_v8 = vmul.f32 %v763_v60, %v399_v38 }
  0xaf   : > { %v443_v46 = vpop.permute.xlu0 %442  ;;  %v899_v14 = vpop.permute.xlu2 %518 }
  0xb7   : > { %v463_v10 = vpop.permute.xlu1 %462  ;;  %v445_v11 = vpop.permute.xlu0 %444 }
  0xb8   : > { %v449_v13 = vsel %vm448_vm1, %v443_v46, %v445_v11  ;;  %v450_v25 = vsel %vm448_vm1, %v445_v11, %v443_v46  ;;  %v521_v9 = vpop.permute.xlu2 %520  ;;  %v552_v46 = vld.sshfl [vmem:[#allocation1] sm:$0xff pattern:$0x75316420]  ;;  %v364_v11 = vmul.f32 %v362_v2, %v909_v21 }
  0xb9   : > { %v453_v22 = vrot.slane %v449_v13, 4  ;;  %v522_v56 = vsel %vm448_vm1, %v899_v14, %v521_v9  ;;  %v554_v57 = vrot.slane %v552_v46, 7 }
  0xba   : > { %v526_v17 = vrot.slane %v522_v56, 4  ;;  %v366_v26 = vadd.f32 -0.050174303, %v364_v11 }
  0xbb   : > { %v454_v34 = vsel %vm199_vm0, %v450_v25, %v453_v22  ;;  %v558_v19 = vsel %vm415_vm14, %v547_v53, %v554_v57  ;;  %v365_v22 = vadd.f32 -0.050174303, %v363_v3  ;;  %v523_v25 = vsel %vm448_vm1, %v521_v9, %v899_v14 }
  0xbc   : > { %v456_v44 = vsub.f32 %v837_v0, %v454_v34  ;;  %v368_v32 = vmul.f32 %v366_v26, %v909_v21  ;;  %v401_v53 = vmul.f32 %v400_v8, %v921_v33 }
  0xbd   : > { %v367_v28 = vmul.f32 %v365_v22, %v904_v18 }
  0xbe   : > { %v494_v61 = vmul.f32 %v456_v44, %v456_v44 }
  0xbf   : > { %v465_v35 = vpop.permute.xlu1 %464 }
  0xc0   : > { %v467_v37 = vsel %vm466_vm2, %v463_v10, %v465_v35  ;;  %v468_v45 = vsel %vm466_vm2, %v465_v35, %v463_v10  ;;  %v562_v10 = vrot.slane %v559_v58, 4  ;;  %v527_v35 = vsel %vm199_vm0, %v523_v25, %v526_v17 }
  0xc1   : > { %v471_v41 = vrot.slane %v467_v37, 4  ;;  %v369_v37 = vadd.f32 0.08897899, %v367_v28  ;;  %v529_v44 = vsub.f32 %v839_v1, %v527_v35 }
  0xc2   : > { %v563_v36 = vsel %vm199_vm0, %v558_v19, %v562_v10 }
  0xc3   : > { %v472_v48 = vsel %vm199_vm0, %v468_v45, %v471_v41  ;;  %v370_v41 = vadd.f32 0.08897899, %v368_v32  ;;  %v371_v42 = vmul.f32 %v369_v37, %v904_v18  ;;  %v565_v46 = vsub.f32 %v839_v1, %v563_v36 }
  0xc4   : > { %v474_v51 = vsub.f32 %v837_v0, %v472_v48  ;;  %v384_v0 = vmul.f32 %v761_v55, %v919_v30  ;;  %v566_v2 = vmul.f32 %v529_v44, %v529_v44  ;;  %v708_v36 = vsel %vm433_vm9, 1.0, %v796_v16 }
  0xc5   : > { %v372_v48 = vmul.f32 %v370_v41, %v909_v21  ;;  %v373_v49 = vadd.f32 -0.2145988, %v371_v42  ;;  %v569_v3 = vmul.f32 %v565_v46, %v565_v46 }
  0xc6   : > { %v495_v62 = vmul.f32 %v474_v51, %v474_v51  ;;  %v385_v13 = vmul.f32 %v761_v55, %v384_v0 }
  0xc7   : > { %v374_v50 = vadd.f32 -0.2145988, %v372_v48 }
  0xc8   : > { %v496_v4 = vadd.f32 %v495_v62, %v494_v61  ;;  %v386_v27 = vmul.f32 0.5, %v385_v13  ;;  %v403_v62 = vsel %vm402_vm5, %v921_v33, %v401_v53  ;;  %v200_v13 = vsel %vm199_vm0, %v845_v5, 0.0 }
  0xc9   : > { %v376_v60 = vmul.f32 %v374_v50, %v909_v21 }
  0xca   : > { %v498_v24 = vadd.f32 %v497_v52, %v496_v4  ;;  %v387_v34 = vsub.f32 1.5, %v386_v27  ;;  %v393_v52 = vand.u32 2147483648, %v919_v30 }
  0xcb   : > { %v378_v20 = vadd.f32 1.5707963, %v376_v60 }
  0xcc   : > { %v953_v31 = vadd.f32 1e-06, %v498_v24  ;;  %v388_v43 = vmul.f32 %v761_v55, %v387_v34  ;;  %v375_v55 = vmul.f32 %v373_v49, %v904_v18  ;;  %v405_v18 = vand.u32 2147483648, %v921_v33 }
  0xcd   : > { %v201_v33 = vsel %vm199_vm0, %v847_v6, 0.0  ;;  %v189_v6 = vld [vmem:[%s1013_s0] sm:$0x3] }
  0xce   : > { %764 = vrsqrt.f32 %v953_v31  ;;  %v389_v51 = vmul.f32 %v388_v43, %v919_v30  ;;  %v377_v61 = vadd.f32 1.5707963, %v375_v55  ;;  %v406_v10 = vsel %vm404_vm6, %v405_v18, %v403_v62 }
  0xcf   : > { %v538_v40 = vpop.permute.xlu1 %537  ;;  %v536_v14 = vpop.permute.xlu0 %535  ;;  %v408_v21 = vmul.f32 %v406_v10, %v378_v20  ;;  %v202_v24 = vadd.f32 %v201_v33, %v200_v13  ;;  %v588_v35 = vperm.slane %v189_v6, 1  ;;  %v587_v38 = vperm.slane %v189_v6, 0 }
  0xd0   : > { %v539_v45 = vsel %vm466_vm2, %v536_v14, %v538_v40  ;;  %v540_v9 = vsel %vm466_vm2, %v538_v40, %v536_v14  ;;  %v391_v56 = vsel %vm390_vm3, %v919_v30, %v389_v51  ;;  %vm507_vm10 = vcmp.eq.f32.partialorder %v953_v31, inf }
  0xd1   : > { %v543_v47 = vrot.slane %v539_v45, 4  ;;  %v394_v59 = vsel %vm392_vm4, %v393_v52, %v391_v56  ;;  %v412_v22 = vsub.f32 3.1415927, %v408_v21  ;;  %203 = vadd.xlane.f32.xlu2 %v202_v24  ;;  %v592_v39 = vmul.f32 %v708_v36, %v588_v35 }
  0xd2   : > { %v407_v4 = vmul.f32 %v394_v59, %v377_v61  ;;  %v591_v42 = vmul.f32 %v708_v36, %v587_v38  ;;  %v510_v45 = vand.u32 2147483648, %v953_v31  ;;  %vm509_vm12 = vcmp.eq.f32.partialorder %v953_v31, 0.0 }
  0xd3   : > { %v544_v54 = vsel %vm199_vm0, %v540_v9, %v543_v47  ;;  %v414_v26 = vsel %vm410_vm8, %v408_v21, %v412_v22  ;;  %v595_v44 = vrot.slane %v592_v39, 4 }
  0xd4   : > { %v765_v57 = vpop.eup %764  ;;  %v546_v58 = vsub.f32 %v839_v1, %v544_v54  ;;  %v411_v11 = vsub.f32 3.1415927, %v407_v4  ;;  %v417_v5 = vsel %vm415_vm14, %v414_v26, 0.0 }
  0xd5   : > { %v501_v30 = vmul.f32 %v765_v57, %v953_v31  ;;  %v596_v49 = vsel %vm199_vm0, %v591_v42, %v595_v44 }
  0xd6   : > { %v567_v0 = vmul.f32 %v546_v58, %v546_v58  ;;  %v413_v23 = vsel %vm409_vm7, %v407_v4, %v411_v11 }
  0xd7   : > { %v502_v19 = vmul.f32 %v765_v57, %v501_v30  ;;  %v416_v63 = vsel %vm415_vm14, %v413_v23, 0.0 }
  0xd8   : > { %v568_v1 = vadd.f32 %v567_v0, %v566_v2  ;;  %v418_v27 = vadd.f32 %v417_v5, %v416_v63 }
  0xd9   : > { %v503_v12 = vmul.f32 0.5, %v502_v19 }
  0xda   : > { %v570_v17 = vadd.f32 %v569_v3, %v568_v1  ;;  %419 = vadd.xlane.f32.xlu0 %v418_v27 }
  0xdb   : > { %v504_v15 = vsub.f32 1.5, %v503_v12 }
  0xdc   : > { %v571_v25 = vadd.f32 1e-06, %v570_v17 }
  0xdd   : > { %v505_v32 = vmul.f32 %v765_v57, %v504_v15 }
  0xde   : > { %766 = vrsqrt.f32 %v571_v25  ;;  %vm579_vm11 = vcmp.eq.f32.partialorder %v571_v25, inf  ;;  %v582_v9 = vand.u32 2147483648, %v571_v25  ;;  %vm581_vm13 = vcmp.eq.f32.partialorder %v571_v25, 0.0 }
  0xdf   : > { %v506_v40 = vmul.f32 %v505_v32, %v953_v31 }
  0xe1   : > { %v508_v43 = vsel %vm507_vm10, %v953_v31, %v506_v40 }
  0xe2   : > { %v511_v46 = vsel %vm509_vm12, %v510_v45, %v508_v43 }
  0xe4   : > { %v767_v28 = vpop.eup %766 }
  0xe5   : > { %v573_v29 = vmul.f32 %v767_v28, %v571_v25 }
  0xe7   : > { %v574_v34 = vmul.f32 %v767_v28, %v573_v29 }
  0xe9   : > { %v575_v37 = vmul.f32 0.5, %v574_v34 }
  0xeb   : > { %v576_v14 = vsub.f32 1.5, %v575_v37 }
  0xed   : > { %v577_v41 = vmul.f32 %v767_v28, %v576_v14 }
  0xef   : > { %v578_v8 = vmul.f32 %v577_v41, %v571_v25 }
  0xf1   : > { %v580_v16 = vsel %vm579_vm11, %v571_v25, %v578_v8 }
  0xf2   : > { %v583_v47 = vsel %vm581_vm13, %v582_v9, %v580_v16 }
  0xf3   : > { %v584_v48 = vsub.f32 %v511_v46, %v583_v47 }
  0xf5   : > { %v585_v51 = vand.u32 2147483647, %v584_v48 }
  0xf7   : > { %v598_v52 = vmul.f32 %v596_v49, %v585_v51 }
  0xf9   : > { %601 = vst [vmem:[#allocation1] ss:$2 sm:$0xff] %v598_v52 }
 0x100   : > { %v602_v53 = vld.sshfl [vmem:[#allocation1] sm:$0xff pattern:$0x75316420]  ;;  %v603_v54 = vld.sshfl [vmem:[#allocation1 + $0x8] sm:$0xff pattern:$0x75316420] }
 0x101   : > { %v606_v50 = vsel %vm199_vm0, %v602_v53, 0.0  ;;  %v607_v55 = vsel %vm199_vm0, %v603_v54, 0.0 }
 0x102   : > { %v608_v56 = vadd.f32 %v607_v55, %v606_v50 }
 0x104   : > { %609 = vadd.xlane.f32.xlu1 %v608_v56 }
 0x144   : > { %v204_v31 = vpop.xlane.xlu2 %203 }
 0x145   : > { %v205_v57 = vrot.slane %v204_v31, 4 }
 0x147   : > { %v206_v58 = vadd.f32 %v205_v57, %v204_v31 }
 0x149   : > { %v207_v60 = vrot.slane %v206_v58, 2 }
 0x14b   : > { %v208_v62 = vadd.f32 %v207_v60, %v206_v58 }
 0x14d   : > { %v420_v59 = vpop.xlane.xlu0 %419  ;;  %v209_v0 = vrot.slane %v208_v62, 1 }
 0x14e   : > { %v421_v61 = vrot.slane %v420_v59, 4 }
 0x14f   : > { %v210_v18 = vadd.f32 %v209_v0, %v208_v62 }
 0x150   : > { %v422_v2 = vadd.f32 %v421_v61, %v420_v59 }
 0x151   : > { %719 = vpush %v210_v18 }
 0x152   : > { %v423_v3 = vrot.slane %v422_v2, 2 }
 0x154   : > { %v424_v30 = vadd.f32 %v423_v3, %v422_v2 }
 0x156   : > { %v425_v20 = vrot.slane %v424_v30, 1 }
 0x158   : > { %v426_v4 = vadd.f32 %v425_v20, %v424_v30 }
 0x15a   : > { %721 = vpush %v426_v4 }
 0x177   : > { %v610_v1 = vpop.xlane.xlu1 %609 }
 0x178   : > { %v611_v10 = vrot.slane %v610_v1, 4 }
 0x17a   : > { %v612_v21 = vadd.f32 %v611_v10, %v610_v1 }
 0x17c   : > { %v613_v11 = vrot.slane %v612_v21, 2 }
 0x17e   : > { %v614_v13 = vadd.f32 %v613_v11, %v612_v21 }
 0x180   : > { %v615_v17 = vrot.slane %v614_v13, 1 }
 0x182   : > { %v616_v33 = vadd.f32 %v615_v17, %v614_v13  ;;  %s720_s29 = spop %719 }
 0x183   : > { %s212_s30 = sadd.f32 %s720_s29, %s190_s27 }
 0x184   : > { %723 = vpush %v616_v33 }
 0x185   : > { %214 = sst [smem:[#allocation2]] %s212_s30  ;;  %s626_s7 = smul.f32 0.00048828125, %s212_s30 }
 0x18b   : > { %s722_s4 = spop %721 }
 0x18c   : > { %s428_s5 = sadd.f32 %s722_s4, %s707_s28 }
 0x18e   : > { %430 = sst [smem:[#allocation2 + $0x1]] %s428_s5  ;;  %s628_s8 = smul.f32 6.21699e-05, %s428_s5 }
 0x190   : > { %s629_s16 = sadd.f32 %s628_s8, %s626_s7 }
 0x1b5   : > { %s724_s9 = spop %723 }
 0x1b6   : > { %s618_s10 = sadd.f32 %s724_s9, %s709_s6 }
 0x1b8   : > { %620 = sst [smem:[#allocation2 + $0x2]] %s618_s10  ;;  %s631_s17 = smul.f32 7.407407e-05, %s618_s10 }
 0x1ba   : > { %s632_s18 = sadd.f32 %s631_s17, %s629_s16 }
 0x1bc   : > { %730 = sst [smem:[#allocation3]] (%p736_p5), %s632_s18 }
 0x1bd   : > { %732 = dma.smem_to_hbm (%p736_p5), %s798_s19, 16, %s642_s15, [#allocation4]  }
 0x1be   : > { %787 = dma.done.wait (%p736_p5), [#allocation4], 16  }
 0x1bf   : > { %789 = vsyncadd (%p736_p5), [#allocation4], 4294967280 }
 0x1c0   : > { %650 = sfence }
 0x1c1 PF: > { %s14_s12 = sadd.s32 1, %s792_s12  }
 0x1c2   : > { %p11_p6 = scmp.ge.s32.totalorder %s14_s12, 4  }
 0x1c4   :  { %13 = sbr.rel (!%p11_p6) target bundleno = 1 (0x1), region = 77 }
 0x1c9   :  { %656 = vsyncpa [#allocation4], 1 }
 0x1ca   :  { %658 = vsyncpa [#allocation4 + $0x1], 1 }

</bundles_post_ra>
